<compile_context>
chip_gen: v6e
topology: v6e:2x2x1
jax: 0.10.0
libtpu: 0.0.40
codegen_flags: <defaults>
</compile_context>

<pallas_src>
import jax
import jax.numpy as jnp
from jax import lax
from jax.experimental import pallas as pl
from jax.experimental.pallas import tpu as pltpu


def _round_up(x, m):
    return -(-x // m) * m


# --------------------------------------------------------------------------
# Kernel
# --------------------------------------------------------------------------
def _mlp_kernel(x_ref, w_ref, b_ref, o_ref):
    # x_ref: (1, C, thw) slab of the NCHW input (C = sublane, thw = lane)
    # w_ref: (C, E)      resident weight (PyTorch W transposed)
    # b_ref: (1, E)      resident f32 bias
    # o_ref: (1, thw, E) token-major output tile
    #
    # Contract over the sublane (C) axis so no HBM transpose of the NCHW
    # activation is ever materialized.  Any in-kernel relayout this implies is
    # hidden under the HBM DMA shadow on v5e/v6e; on v7x the 512-2048 thw
    # range keeps it pipelined with the MXU pushes.
    #
    # NOTE: the last grid block along thw may be partial; OOB input lanes are
    # garbage but their output rows are write-masked.  Do NOT add a reduction
    # across the thw axis inside this kernel.
    acc = lax.dot_general(
        x_ref[0],                                     # (C, thw)
        w_ref[...],                                   # (C, E)
        dimension_numbers=(((0,), (0,)), ((), ())),   # contract over C
        preferred_element_type=jnp.float32,
    )                                                 # -> (thw, E)
    o_ref[0] = (acc + b_ref[...]).astype(o_ref.dtype)


# --------------------------------------------------------------------------
# Hardware queries (generation-aware budgets)
# --------------------------------------------------------------------------
def _physical_vmem_bytes():
    try:
        info = pltpu.get_tpu_info()
        for attr in ("vmem_capacity_bytes", "vmem_bytes", "vmem_size_bytes"):
            v = getattr(info, attr, None)
            if v:
                return int(v)
    except Exception:
        pass
    try:
        kind = jax.devices()[0].device_kind.lower()
        if "v7" in kind:
            return 64 << 20
        if "v5" in kind or "v6" in kind:
            return 128 << 20
    except Exception:
        pass
    return 64 << 20  # conservative default


def _is_two_tensorcore():
    try:
        return "v7" in jax.devices()[0].device_kind.lower()
    except Exception:
        return False


# --------------------------------------------------------------------------
# Tiling / VMEM accounting
# --------------------------------------------------------------------------
def _vmem_footprint_bytes(thw, C, E, x_item, w_item, o_item):
    C_pad = _round_up(C, 16)          # sublane packing (conservative)
    E_pad = _round_up(E, 128)
    thw_lane = _round_up(thw, 128)
    thw_sub = _round_up(thw, 8)
    resident = 2 * C_pad * E_pad * w_item + 2 * 8 * E_pad * 4        # W + bias (dbl-buffered)
    per_tile = (2 * C_pad * thw_lane * x_item                        # x slab  (dbl-buffered)
                + 2 * thw_sub * E_pad * o_item                       # out tile (dbl-buffered)
                + thw_sub * E_pad * 4)                               # f32 matmul/bias intermediate
    return resident + per_tile


def _choose_hw_tile(HW, B, C, E, x_item, w_item, o_item, budget_bytes, two_tc):
    """Largest spatial tile (multiple of 128, or all of HW) within budget."""
    C_pad = _round_up(C, 16)
    E_pad = _round_up(E, 128)
    resident = 2 * C_pad * E_pad * w_item + 2 * 8 * E_pad * 4
    # Per spatial position: dbl-buffered input column + output row + f32 epilogue.
    per_col = 2 * C_pad * x_item + 2 * E_pad * o_item + E_pad * 4
    max_tile = 2048 if (x_item <= 2 or C_pad <= 64) else 1024
    avail = max(budget_bytes - resident, per_col * 128)
    thw_max = min(max_tile, max((avail // per_col) // 128 * 128, 128))

    if HW <= thw_max:
        # Whole spatial extent fits one tile.  Only split on 2-TC parts (v7x)
        # so both TensorCores get work; on single-TC v5e/v6e the split is
        # pure overhead.
        if two_tc and B == 1 and HW >= 256 and HW % 256 == 0:
            return HW // 2
        return HW

    # Prefer a 128-multiple that divides HW exactly (no partial last block).
    cand = thw_max
    while cand >= 128:
        if HW % cand == 0:
            return cand
        cand -= 128

    # Otherwise take the largest tile; the ragged tail is handled by Pallas'
    # masked writeback of the partial last block — no explicit padding pass.
    return thw_max


# --------------------------------------------------------------------------
# Wrapper
# --------------------------------------------------------------------------
def mlp_forward(x_nchw, weight_ec, bias):
    """SegFormer MLP forward: x (B, C, H, W) -> (B, H*W, E).

    weight_ec: PyTorch Linear weight, shape (E, C).  bias: (E,).
    Only the small weight/bias are cast to the activation dtype; the wrapper
    never casts x (that would be an extra HBM pass).  Accumulation and the
    bias add are always f32.
    """
    B, C, H, W = x_nchw.shape
    E, C_w = weight_ec.shape
    assert C_w == C, "weight shape mismatch"
    HW = H * W
    out_dtype = x_nchw.dtype

    x3 = x_nchw.reshape(B, C, HW)                       # pure reshape, no HBM shuffle
    w_ce = jnp.transpose(weight_ec).astype(x3.dtype)    # (C, E) — small, one-time
    b2 = bias.reshape(1, E).astype(jnp.float32)         # hoisted f32 cast

    x_item = jnp.dtype(x3.dtype).itemsize
    w_item = jnp.dtype(w_ce.dtype).itemsize
    o_item = jnp.dtype(out_dtype).itemsize

    phys_vmem = _physical_vmem_bytes()
    vmem_cap = (phys_vmem * 3) // 4            # leave room for Mosaic internals
    budget = vmem_cap // 2                     # sizing budget (headroom for unmodeled buffers)

    thw = _choose_hw_tile(HW, B, C, E, x_item, w_item, o_item, budget,
                          _is_two_tensorcore())
    n_hw = pl.cdiv(HW, thw)

    footprint = _vmem_footprint_bytes(thw, C, E, x_item, w_item, o_item)
    vmem_limit = int(min(vmem_cap, max(16 << 20, 2 * footprint + (2 << 20))))

    cost = pl.CostEstimate(
        flops=2 * B * HW * C * E,
        transcendentals=0,
        bytes_accessed=(B * C * HW * x_item + C * E * w_item + E * 4
                        + B * HW * E * o_item),
    )

    return pl.pallas_call(
        _mlp_kernel,
        out_shape=jax.ShapeDtypeStruct((B, HW, E), out_dtype),
        grid_spec=pltpu.PrefetchScalarGridSpec(
            num_scalar_prefetch=0,
            grid=(B, n_hw),
            in_specs=[
                pl.BlockSpec((1, C, thw), lambda b, j: (b, 0, j)),  # NCHW slab
                pl.BlockSpec((C, E), lambda b, j: (0, 0)),          # resident W.T
                pl.BlockSpec((1, E), lambda b, j: (0, 0)),          # resident bias
            ],
            out_specs=pl.BlockSpec((1, thw, E), lambda b, j: (b, j, 0)),
        ),
        compiler_params=pltpu.CompilerParams(
            dimension_semantics=("parallel", "parallel"),
            vmem_limit_bytes=vmem_limit,
        ),
        cost_estimate=cost,
    )(x3, w_ce, b2)


# --------------------------------------------------------------------------
# Self-test
# --------------------------------------------------------------------------
if __name__ == "__main__":
    def reference(x, weight, bias):
        # Exact PyTorch semantics: flatten(2).transpose(1,2), then x @ W.T + b.
        B, C, H, W = x.shape
        tok = jnp.transpose(x.reshape(B, C, H * W), (0, 2, 1))
        return jnp.einsum("bnc,ec->bne", tok, weight) + bias

    def run_case(key, B, C, H, W, E):
        kx, kw, kb = jax.random.split(key, 3)
        x = jax.random.normal(kx, (B, C, H, W), dtype=jnp.float32)
        bound = 1.0 / (C ** 0.5)
        weight = jax.random.uniform(kw, (E, C), minval=-bound, maxval=bound,
                                    dtype=jnp.float32)
        bias = jax.random.uniform(kb, (E,), minval=-bound, maxval=bound,
                                  dtype=jnp.float32)
        out = jax.block_until_ready(mlp_forward(x, weight, bias))
        ref = reference(x, weight, bias)
        assert out.shape == (B, H * W, E)
        err = float(jnp.max(jnp.abs(out - ref)))
        assert jnp.allclose(out, ref, atol=1e-4, rtol=1e-4), f"max abs err = {err}"

    key = jax.random.PRNGKey(0)
    k1, k2 = jax.random.split(key)

    # Case 1: small, lane-dense E, spatial extent fits a single tile per batch.
    run_case(k1, B=2, C=128, H=16, W=16, E=256)
    # Case 2: ragged spatial extent (HW = 2500, not a multiple of 128) —
    # exercises the no-padding partial-last-block path.
    run_case(k2, B=1, C=64, H=50, W=50, E=128)

    print("KERNEL_OK")
</pallas_src>

<mosaic_0001>
module attributes {stable_mosaic.version = 11 : i64} {
  func.func @_mlp_kernel(%arg0: i32, %arg1: i32, %arg2: memref<1x128x256xf32, #tpu.memory_space<vmem>>, %arg3: memref<128x256xf32, #tpu.memory_space<vmem>>, %arg4: memref<1x256xf32, #tpu.memory_space<vmem>>, %arg5: memref<1x256x256xf32, #tpu.memory_space<vmem>>) attributes {dimension_semantics = [#tpu.dimension_semantics<parallel>, #tpu.dimension_semantics<parallel>], iteration_bounds = array<i64: 2, 1>, scalar_prefetch = 0 : i64, scratch_operands = 0 : i64, tpu.core_type = #tpu.core_type<tc>, window_params = [{transform_indices = @transform_0, window_bounds = array<i64: 1, 128, 256>}, {pipeline_mode = #tpu.pipeline_mode<synchronous>, transform_indices = @transform_1, window_bounds = array<i64: 128, 256>}, {pipeline_mode = #tpu.pipeline_mode<synchronous>, transform_indices = @transform_2, window_bounds = array<i64: 1, 256>}, {transform_indices = @transform_3, window_bounds = array<i64: 1, 256, 256>}]} {
    %c0 = arith.constant 0 : index
    %c0_0 = arith.constant 0 : index
    %c0_1 = arith.constant 0 : index
    %0 = vector.load %arg2[%c0, %c0_0, %c0_1] : memref<1x128x256xf32, #tpu.memory_space<vmem>>, vector<1x128x256xf32>
    %1 = vector.shape_cast %0 : vector<1x128x256xf32> to vector<128x256xf32>
    %c0_2 = arith.constant 0 : index
    %c0_3 = arith.constant 0 : index
    %2 = vector.load %arg3[%c0_2, %c0_3] : memref<128x256xf32, #tpu.memory_space<vmem>>, vector<128x256xf32>
    %cst = arith.constant dense<0.000000e+00> : vector<256x256xf32>
    %3 = tpu.matmul %1, %2, %cst {dimension_numbers = #tpu.dot_dimension_numbers<[0], [0], [1], [1], [0, 1, 1, 1], [], []>} : vector<128x256xf32>, vector<128x256xf32>, vector<256x256xf32> -> vector<256x256xf32>
    %c0_4 = arith.constant 0 : index
    %c0_5 = arith.constant 0 : index
    %4 = vector.load %arg4[%c0_4, %c0_5] : memref<1x256xf32, #tpu.memory_space<vmem>>, vector<1x256xf32>
    %5 = vector.broadcast %4 : vector<1x256xf32> to vector<256x256xf32>
    %6 = arith.addf %3, %5 : vector<256x256xf32>
    %c0_6 = arith.constant 0 : index
    %c0_7 = arith.constant 0 : index
    %c0_8 = arith.constant 0 : index
    %7 = vector.load %arg5[%c0_6, %c0_7, %c0_8] : memref<1x256x256xf32, #tpu.memory_space<vmem>>, vector<1x256x256xf32>
    %8 = vector.shape_cast %7 : vector<1x256x256xf32> to vector<256x256xf32>
    %9 = vector.shape_cast %6 : vector<256x256xf32> to vector<1x256x256xf32>
    tpu.vector_store %arg5[%c0_6, %c0_7, %c0_8], %9 {strides = array<i32>} : memref<1x256x256xf32, #tpu.memory_space<vmem>>, vector<1x256x256xf32>,
    return
  }
  func.func @transform_0(%arg0: i32, %arg1: i32) -> (i32, i32, i32) {
    %c0_i32 = arith.constant 0 : i32
    %c0_i32_0 = arith.constant 0 : i32
    return %arg0, %c0_i32, %arg1 : i32, i32, i32
  }
  func.func @transform_1(%arg0: i32, %arg1: i32) -> (i32, i32) {
    %c0_i32 = arith.constant 0 : i32
    %c0_i32_0 = arith.constant 0 : i32
    %c0_i32_1 = arith.constant 0 : i32
    return %c0_i32, %c0_i32_0 : i32, i32
  }
  func.func @transform_2(%arg0: i32, %arg1: i32) -> (i32, i32) {
    %c0_i32 = arith.constant 0 : i32
    %c0_i32_0 = arith.constant 0 : i32
    %c0_i32_1 = arith.constant 0 : i32
    return %c0_i32, %c0_i32_0 : i32, i32
  }
  func.func @transform_3(%arg0: i32, %arg1: i32) -> (i32, i32, i32) {
    %c0_i32 = arith.constant 0 : i32
    %c0_i32_0 = arith.constant 0 : i32
    return %arg0, %arg1, %c0_i32 : i32, i32, i32
  }
}

</mosaic_0001>

<bundles_post_ra>
// kernel: tpu_custom_call.1
= control target key start
LH: loop header
LB: loop body
LE: loop exit
PB: predicated region body
PF: predicated region fallthrough
CT: control target
= control target key end

     0   :  { %8 = vsyncpa [#allocation3], 0  ;;  %s1600_s0 = inlined_call_operand.hbm [shape: f32[2,128,256], index: 0, kind: input, shape index: {}]   ;;  %s1601_s1 = inlined_call_operand.hbm [shape: f32[128,256], index: 1, kind: input, shape index: {}]   ;;  %s1602_s2 = inlined_call_operand.vmem [shape: f32[1,256], index: 2, kind: input, shape index: {}]   ;;  %s1603_s3 = inlined_call_operand.hbm [shape: f32[2,256,256], index: 3, kind: output, shape index: {}]  }
   0x1   :  { %10 = vsyncpa [#allocation3 + $0x1], 0 }
   0x2   :  { %11 = vsyncpa [#allocation6], 0 }
   0x3   :  { %12 = vsyncpa [#allocation4], 0 }
   0x4   :  { %14 = vsyncpa [#allocation4 + $0x1], 0  ;;  %s1208_s12 = smov 0   ;;  %s1210_s13 = smov 0  }
   0x5   :  { %s1212_s14 = smov 0   ;;  %s1214_s15 = smov 0  }
   0x6   :  { %s1216_s16 = smov 0   ;;  %s1218_s17 = smov 0  }
   0x7 LB: > { %s799_s18 = sadd.s32 4294967295, %s1178_s17   ;;  %s800_s19 = sadd.s32 4294967294, %s1178_s17   ;;  %s1178_s17 = sphi %s1218_s17, %s20_s17   ;;  %s1174_s16 = sphi %s1216_s16, %s1625_s16   ;;  %s1170_s15 = sphi %s1214_s15, %s1624_s15   ;;  %s1166_s14 = sphi %s1212_s14, %s1623_s14   ;;  %s1162_s13 = sphi %s1210_s13, %s1622_s13   ;;  %s1158_s12 = sphi %s1208_s12, %s1621_s12  }
   0x8   : > { %p54_p0 = scmp.ne.s32.totalorder %s1162_s13, %s1158_s12  ;;  %p1242_p1 = scmp.eq.s32.totalorder %s799_s18, 0 }
   0x9   : > { %p1246_p2 = scmp.eq.s32.totalorder %s799_s18, 1  ;;  %p128_p3 = scmp.eq.s32.totalorder %s800_s19, 1 }
   0xa   : > { %p1252_p4 = por %p1242_p1, %p54_p0  ;;  %p801_p5 = scmp.ge.s32.totalorder %s1178_s17, 1 }
   0xb   : > { %p1257_p6 = por %p128_p3, %p54_p0  ;;  %p135_p7 = scmp.lt.s32.totalorder %s1178_s17, 3 }
   0xc   : > { %s1609_s22 = scalar_select %p1252_p4, 1, 0 }
   0xd   : > { %s1610_s23 = scalar_select %p1257_p6, 1, 0 }
   0xe   : > { %p1262_p8 = pnand %p801_p5, %p135_p7  ;;  %s1180_s25 = smov [#allocation5]  }
   0xf   : > { %s147_s26 = sshll.u32 %s1180_s25, 4  ;;  %s32_s28 = sadd.s32 1, %s1174_s16  ;;  %s148_s26 = int_to_ptr.vmem [resolvable:$true] %s147_s26 }
  0x10   : > { %p858_p9 = pneg %p1262_p8  ;;  %s1051_s29 = scalar_lea.vmem %s148_s26, 4096 }
  0x11   : > { %p1052_p13 = scmp.ne.s32.totalorder %s148_s26, %s1051_s29  ;;  %p1059_p5 = scmp.lt.s32.totalorder %s148_s26, %s148_s26 }
  0x12   : > { %p1271_p11 = pnand %p858_p9, %p1242_p1  ;;  %p1060_p7 = scmp.lt.s32.totalorder %s1051_s29, %s1051_s29 }
  0x14   : > { %p1042_p12 = pneg %p1271_p11  ;;  %p1061_p6 = por %p1060_p7, %p1059_p5 }
  0x16   : > { %p1054_p0 = pnand %p1052_p13, %p1042_p12 }
  0x18   : > { %p1055_p3 = pneg %p1054_p0 }
  0x1a   : > { %p1062_p4 = pnand %p1061_p6, %p1055_p3 }
  0x1c   : > { %1065 = shalt.err (!%p1062_p4)
}
  0x1d   : > { %s1605_s30 = smov 256   ;;  %s1606_s4 = smov 16  }
  0x1e   : > { %861 = dma.hbm_to_vmem [thread:$0]  (!%p1271_p11), %s1601_s1, 4096, %s148_s26, [#allocation6], %s1605_s30, %s1605_s30, %s1606_s4  }
  0x1f   : > { %p34_p4 = scmp.ge.s32.totalorder %s32_s28, 2  ;;  %s41_s7 = sadd.s32 1, %s1166_s14 }
  0x20   : > { %p48_p6 = scmp.ne.s32.totalorder %s1166_s14, %s1162_s13  ;;  %p49_p9 = scmp.eq.s32.totalorder %s1178_s17, 0 }
  0x21   : > { %s1627_s28 = smov (%p34_p4, %s32_s28), 0  ;;  %p871_p0 = scmp.lt.s32.totalorder %s1178_s17, 2 }
  0x22   : > { %p1292_p12 = por %p49_p9, %p48_p6  ;;  %p1298_p13 = por %p1246_p2, %p48_p6 }
  0x23   : > { %s36_s10 = ssub.s32 %s1174_s16, %s1627_s28  ;;  %s164_s11 = sand.u32 1, %s1166_s14  }
  0x24   : > { %p39_p11 = scmp.eq.s32.totalorder %s36_s10, 0  ;;  %s804_s18 = sshll.u32 %s164_s11, 8 }
  0x25   : > { %s816_s25 = sshll.u32 %s1174_s16, 12  ;;  %s168_s5 = scalar_lea.vmem [#allocation2], %s804_s18 }
  0x26   : > { %s1307_s19 = scalar_select %p39_p11, %s1166_s14, %s41_s7  }
  0x27   : > { %s176_s29 = scalar_lea.hbm %s1600_s0, %s816_s25  ;;  %s177_s6 = sshll.u32 %s168_s5, 4  ;;  %s178_s6 = int_to_ptr.vmem [resolvable:$true] %s177_s6 }
  0x28   : > { %p1315_p2 = pnand %p871_p0, %p1292_p12  ;;  %s165_s30 = scalar_lea.sflag [#allocation3], %s164_s11 }
  0x29   : > { %s1079_s10 = scalar_lea.vmem %s178_s6, 4096  ;;  %s1183_s7 = smov [#allocation2]  }
  0x2a   : > { %p1068_p3 = pneg %p1315_p2  ;;  %p1080_p5 = scmp.ne.s32.totalorder %s178_s6, %s1079_s10 }
  0x2b   : > { %s1084_s4 = sshll.u32 %s1183_s7, 4  ;;  %s1085_s4 = int_to_ptr.vmem [resolvable:$false] %s1084_s4 }
  0x2c   : > { %p1082_p7 = pnand %p1080_p5, %p1068_p3  ;;  %s1086_s25 = scalar_lea.vmem %s1085_s4, 8192 }
  0x2d   : > { %p1087_p6 = scmp.lt.s32.totalorder %s178_s6, %s1085_s4  ;;  %p1088_p9 = scmp.lt.s32.totalorder %s1086_s25, %s1079_s10 }
  0x2e   : > { %p1083_p4 = pneg %p1082_p7 }
  0x2f   : > { %p1089_p11 = por %p1088_p9, %p1087_p6 }
  0x31   : > { %p1090_p10 = pnand %p1089_p11, %p1083_p4 }
  0x33   : > { %1093 = shalt.err (!%p1090_p10)
}
  0x34   : > { %s1616_s8 = smov 16   ;;  %s1617_s18 = smov 256  }
  0x35   : > { %865 = dma.hbm_to_vmem [thread:$0]  (!%p1315_p2), %s176_s29, 4096, %s178_s6, %s165_s30, %s1617_s18, %s1617_s18, %s1616_s8  }
  0x36   : > { %189 = sbr.rel (%p1262_p8) target bundleno = 463 (0x1cf), region = 32  ;;  %s1329_s11 = sand.u32 (!%p1262_p8), 1, %s1162_s13  }
  0x37   : > { %s808_s4 = sshll.u32 (!%p1262_p8), %s1329_s11, 8  ;;  %s192_s26 = scalar_lea.sflag (!%p1262_p8), [#allocation3], %s1329_s11 }
  0x38   : > { %s1333_s27 = scalar_lea.vmem (!%p1262_p8), [#allocation2], %s808_s4  ;;  %p1618_p10 = scmp.ne.s32.totalorder (!%p1262_p8), %s1609_s22, 0 }
  0x3b   : > { %1145 = dma.done.wait (%p1618_p10), %s192_s26, 4096  }
  0x3c   : > { %1147 = vsyncadd (%p1618_p10), %s192_s26, 4294963200 }
  0x3d   : > { %1149 = dma.done.wait (%p1242_p1), [#allocation6], 4096  }
  0x3e   : > { %1151 = vsyncadd (%p1242_p1), [#allocation6], 4294963200  ;;  %v224_v0 = vld [vmem:[%s1333_s27] sm:$0xff]  ;;  %v225_v1 = vld [vmem:[%s1333_s27 + $0x8] sm:$0xff]  ;;  %v1184_v5 = vmov 0.0   ;;  %s810_s24 = sshll.u32 %s1329_s11, 9 }
  0x3f   : > { %v226_v2 = vld [vmem:[%s1333_s27 + $0x10] sm:$0xff]  ;;  %v928_v3 = vpack.i.bf16 %v225_v1, %v224_v0  ;;  %v227_v4 = vld [vmem:[%s1333_s27 + $0x18] sm:$0xff]  ;;  %428 = vmatprep.mubr.f32.mxu0 %v1184_v5  ;;  %524 = vmatprep.mubr.f32.mxu1 %v1184_v5  ;;  %v228_v7 = vld [vmem:[%s1333_s27 + $0x20] sm:$0xff]  ;;  %s1417_s30 = scalar_lea.vmem [#allocation7], %s810_s24  ;;  %s817_s29 = sshll.u32 %s1170_s15, 13 }
  0x40   : > { %v930_v6 = vpack.i.bf16 %v227_v4, %v226_v2  ;;  %v229_v8 = vld [vmem:[%s1333_s27 + $0x28] sm:$0xff]  ;;  %v230_v10 = vld [vmem:[%s1333_s27 + $0x30] sm:$0xff]  ;;  %v231_v11 = vld [vmem:[%s1333_s27 + $0x38] sm:$0xff]  ;;  %s702_s5 = sshll.u32 %s1417_s30, 4  ;;  %s1544_s10 = scalar_lea.hbm %s1603_s3, %s817_s29  ;;  %s1546_s5 = int_to_ptr.vmem [resolvable:$true] %s702_s5 }
  0x41   : > { %929 = vxpose.xlu0.b32.start [1/16] %v928_v3, 128  ;;  %v932_v9 = vpack.i.bf16 %v229_v8, %v228_v7  ;;  %v287_v12 = vld [vmem:[#allocation5 + $0xf8] sm:$0xff]  ;;  %v934_v13 = vpack.i.bf16 %v231_v11, %v230_v10  ;;  %v286_v14 = vld [vmem:[#allocation5 + $0xf0] sm:$0xff]  ;;  %v285_v15 = vld [vmem:[#allocation5 + $0xe8] sm:$0xff]  ;;  %s686_s15 = scalar_lea.sflag [#allocation4], %s1329_s11  ;;  %s1094_s7 = scalar_lea.vmem %s1546_s5, 8192 }
  0x42   : > { %364 = vmatprep.subr.mxu0 %v287_v12  ;;  %v284_v16 = vld [vmem:[#allocation5 + $0xe0] sm:$0xff]  ;;  %v233_v18 = vld [vmem:[%s1333_s27 + $0x48] sm:$0xff]  ;;  %818 = vmatprep.subr.mxu1 %v287_v12  ;;  %v283_v19 = vld [vmem:[#allocation5 + $0xd8] sm:$0xff]  ;;  %p1095_p1 = scmp.ne.s32.totalorder %s1546_s5, %s1094_s7  ;;  %s1185_s25 = smov [#allocation7]  }
  0x43   : > { %v232_v17 = vld [vmem:[%s1333_s27 + $0x40] sm:$0xff]  ;;  %365 = vmatpush1.msra.mxu0 %v286_v14  ;;  %834 = vmatpush1.msra.mxu1 %v286_v14  ;;  %v282_v20 = vld [vmem:[#allocation5 + $0xd0] sm:$0xff]  ;;  %v281_v22 = vld [vmem:[#allocation5 + $0xc8] sm:$0xff]  ;;  %s1098_s8 = sshll.u32 %s1185_s25, 4  ;;  %s1099_s8 = int_to_ptr.vmem [resolvable:$false] %s1098_s8 }
  0x44   : > { %366 = vmatprep.subr.mxu0 %v285_v15  ;;  %819 = vmatprep.subr.mxu1 %v285_v15  ;;  %v936_v21 = vpack.i.bf16 %v233_v18, %v232_v17  ;;  %v234_v23 = vld [vmem:[%s1333_s27 + $0x50] sm:$0xff]  ;;  %v235_v24 = vld [vmem:[%s1333_s27 + $0x58] sm:$0xff]  ;;  %v280_v25 = vld [vmem:[#allocation5 + $0xc0] sm:$0xff]  ;;  %p1096_p8 = pnand %p1095_p1, %p1298_p13  ;;  %s1100_s18 = scalar_lea.vmem %s1099_s8, 16384 }
  0x45   : > { %931 = vxpose.xlu0.b32.cont [2/16] %v930_v6, 128  ;;  %367 = vmatpush1.msra.mxu0 %v284_v16  ;;  %v279_v26 = vld [vmem:[#allocation5 + $0xb8] sm:$0xff]  ;;  %v278_v27 = vld [vmem:[#allocation5 + $0xb0] sm:$0xff]  ;;  %v938_v28 = vpack.i.bf16 %v235_v24, %v234_v23  ;;  %v277_v29 = vld [vmem:[#allocation5 + $0xa8] sm:$0xff]  ;;  %p1101_p0 = scmp.lt.s32.totalorder %s1546_s5, %s1099_s8  ;;  %p1102_p2 = scmp.lt.s32.totalorder %s1100_s18, %s1094_s7 }
  0x46   : > { %835 = vmatpush1.msra.mxu1 %v284_v16  ;;  %368 = vmatprep.subr.mxu0 %v283_v19  ;;  %v236_v30 = vld [vmem:[%s1333_s27 + $0x60] sm:$0xff]  ;;  %v237_v31 = vld [vmem:[%s1333_s27 + $0x68] sm:$0xff]  ;;  %v275_v33 = vld [vmem:[#allocation5 + $0x98] sm:$0xff]  ;;  %p1097_p12 = pneg %p1096_p8 }
  0x47   : > { %820 = vmatprep.subr.mxu1 %v283_v19  ;;  %369 = vmatpush1.msra.mxu0 %v282_v20  ;;  %v276_v32 = vld [vmem:[#allocation5 + $0xa0] sm:$0xff]  ;;  %v940_v34 = vpack.i.bf16 %v237_v31, %v236_v30  ;;  %v274_v35 = vld [vmem:[#allocation5 + $0x90] sm:$0xff]  ;;  %v239_v37 = vld [vmem:[%s1333_s27 + $0x78] sm:$0xff]  ;;  %p1103_p3 = por %p1102_p2, %p1101_p0 }
  0x48   : > { %836 = vmatpush1.msra.mxu1 %v282_v20  ;;  %370 = vmatprep.subr.mxu0 %v281_v22  ;;  %v238_v36 = vld [vmem:[%s1333_s27 + $0x70] sm:$0xff]  ;;  %v273_v38 = vld [vmem:[#allocation5 + $0x88] sm:$0xff]  ;;  %v272_v39 = vld [vmem:[#allocation5 + $0x80] sm:$0xff] }
  0x49   : > { %933 = vxpose.xlu0.b32.cont [3/16] %v932_v9, 128  ;;  %821 = vmatprep.subr.mxu1 %v281_v22  ;;  %v271_v40 = vld [vmem:[#allocation5 + $0x78] sm:$0xff]  ;;  %v942_v41 = vpack.i.bf16 %v239_v37, %v238_v36  ;;  %v270_v42 = vld [vmem:[#allocation5 + $0x70] sm:$0xff]  ;;  %v240_v43 = vld [vmem:[%s1333_s27 + $0x80] sm:$0xff]  ;;  %p1104_p5 = pnand %p1103_p3, %p1097_p12 }
  0x4a   : > { %371 = vmatpush1.msra.mxu0 %v280_v25  ;;  %837 = vmatpush1.msra.mxu1 %v280_v25  ;;  %v241_v44 = vld [vmem:[%s1333_s27 + $0x88] sm:$0xff]  ;;  %v268_v46 = vld [vmem:[#allocation5 + $0x60] sm:$0xff]  ;;  %v267_v48 = vld [vmem:[#allocation5 + $0x58] sm:$0xff] }
  0x4b   : > { %372 = vmatprep.subr.mxu0 %v279_v26  ;;  %822 = vmatprep.subr.mxu1 %v279_v26  ;;  %v269_v45 = vld [vmem:[#allocation5 + $0x68] sm:$0xff]  ;;  %v944_v47 = vpack.i.bf16 %v241_v44, %v240_v43  ;;  %v242_v49 = vld [vmem:[%s1333_s27 + $0x90] sm:$0xff]  ;;  %v243_v50 = vld [vmem:[%s1333_s27 + $0x98] sm:$0xff] }
  0x4c   : > { %373 = vmatpush1.msra.mxu0 %v278_v27  ;;  %838 = vmatpush1.msra.mxu1 %v278_v27  ;;  %v266_v51 = vld [vmem:[#allocation5 + $0x50] sm:$0xff]  ;;  %v265_v52 = vld [vmem:[#allocation5 + $0x48] sm:$0xff]  ;;  %v264_v53 = vld [vmem:[#allocation5 + $0x40] sm:$0xff]  ;;  %v946_v54 = vpack.i.bf16 %v243_v50, %v242_v49 }
  0x4d   : > { %935 = vxpose.xlu0.b32.cont [4/16] %v934_v13, 128  ;;  %374 = vmatprep.subr.mxu0 %v277_v29  ;;  %v263_v55 = vld [vmem:[#allocation5 + $0x38] sm:$0xff]  ;;  %v244_v56 = vld [vmem:[%s1333_s27 + $0xa0] sm:$0xff]  ;;  %v245_v57 = vld [vmem:[%s1333_s27 + $0xa8] sm:$0xff] }
  0x4e   : > { %823 = vmatprep.subr.mxu1 %v277_v29  ;;  %375 = vmatpush1.msra.mxu0 %v276_v32  ;;  %v262_v58 = vld [vmem:[#allocation5 + $0x30] sm:$0xff]  ;;  %v261_v59 = vld [vmem:[#allocation5 + $0x28] sm:$0xff]  ;;  %v948_v60 = vpack.i.bf16 %v245_v57, %v244_v56  ;;  %v260_v61 = vld [vmem:[#allocation5 + $0x20] sm:$0xff] }
  0x4f   : > { %839 = vmatpush1.msra.mxu1 %v276_v32  ;;  %376 = vmatprep.subr.mxu0 %v275_v33  ;;  %v246_v62 = vld [vmem:[%s1333_s27 + $0xb0] sm:$0xff]  ;;  %v247_v63 = vld [vmem:[%s1333_s27 + $0xb8] sm:$0xff]  ;;  %v257_v2 = vld [vmem:[#allocation5 + $0x8] sm:$0xff] }
  0x50   : > { %824 = vmatprep.subr.mxu1 %v275_v33  ;;  %377 = vmatpush1.msra.mxu0 %v274_v35  ;;  %v259_v0 = vld [vmem:[#allocation5 + $0x18] sm:$0xff]  ;;  %v258_v1 = vld [vmem:[#allocation5 + $0x10] sm:$0xff]  ;;  %v950_v3 = vpack.i.bf16 %v247_v63, %v246_v62  ;;  %v256_v4 = vld [vmem:[#allocation5] sm:$0xff] }
  0x51   : > { %937 = vxpose.xlu0.b32.cont [5/16] %v936_v21, 128  ;;  %840 = vmatpush1.msra.mxu1 %v274_v35  ;;  %v248_v6 = vld [vmem:[%s1333_s27 + $0xc0] sm:$0xff]  ;;  %v249_v7 = vld [vmem:[%s1333_s27 + $0xc8] sm:$0xff]  ;;  %v250_v9 = vld [vmem:[%s1333_s27 + $0xd0] sm:$0xff] }
  0x52   : > { %378 = vmatprep.subr.mxu0 %v273_v38  ;;  %825 = vmatprep.subr.mxu1 %v273_v38  ;;  %v952_v8 = vpack.i.bf16 %v249_v7, %v248_v6  ;;  %v251_v10 = vld [vmem:[%s1333_s27 + $0xd8] sm:$0xff]  ;;  %v252_v12 = vld [vmem:[%s1333_s27 + $0xe0] sm:$0xff]  ;;  %v253_v13 = vld [vmem:[%s1333_s27 + $0xe8] sm:$0xff] }
  0x53   : > { %379 = vmatpush1.msra.mxu0 %v272_v39  ;;  %841 = vmatpush1.msra.mxu1 %v272_v39  ;;  %v954_v11 = vpack.i.bf16 %v251_v10, %v250_v9  ;;  %v956_v14 = vpack.i.bf16 %v253_v13, %v252_v12  ;;  %v254_v15 = vld [vmem:[%s1333_s27 + $0xf0] sm:$0xff]  ;;  %v255_v16 = vld [vmem:[%s1333_s27 + $0xf8] sm:$0xff]  ;;  %v288_v6 = vld [vmem:[%s1602_s2] sm:$0x3] }
  0x54   : > { %380 = vmatprep.subr.mxu0 %v271_v40  ;;  %826 = vmatprep.subr.mxu1 %v271_v40  ;;  %v958_v17 = vpack.i.bf16 %v255_v16, %v254_v15 }
  0x55   : > { %939 = vxpose.xlu0.b32.cont [6/16] %v938_v28, 128  ;;  %381 = vmatpush1.msra.mxu0 %v270_v42 }
  0x56   : > { %842 = vmatpush1.msra.mxu1 %v270_v42  ;;  %382 = vmatprep.subr.mxu0 %v269_v45 }
  0x57   : > { %827 = vmatprep.subr.mxu1 %v269_v45  ;;  %383 = vmatpush1.msra.mxu0 %v268_v46 }
  0x58   : > { %843 = vmatpush1.msra.mxu1 %v268_v46  ;;  %384 = vmatprep.subr.mxu0 %v267_v48 }
  0x59   : > { %941 = vxpose.xlu0.b32.cont [7/16] %v940_v34, 128  ;;  %828 = vmatprep.subr.mxu1 %v267_v48 }
  0x5a   : > { %385 = vmatpush1.msra.mxu0 %v266_v51  ;;  %844 = vmatpush1.msra.mxu1 %v266_v51 }
  0x5b   : > { %386 = vmatprep.subr.mxu0 %v265_v52  ;;  %829 = vmatprep.subr.mxu1 %v265_v52 }
  0x5c   : > { %387 = vmatpush1.msra.mxu0 %v264_v53  ;;  %845 = vmatpush1.msra.mxu1 %v264_v53 }
  0x5d   : > { %943 = vxpose.xlu0.b32.cont [8/16] %v942_v41, 128  ;;  %388 = vmatprep.subr.mxu0 %v263_v55 }
  0x5e   : > { %830 = vmatprep.subr.mxu1 %v263_v55  ;;  %389 = vmatpush1.msra.mxu0 %v262_v58 }
  0x5f   : > { %846 = vmatpush1.msra.mxu1 %v262_v58  ;;  %390 = vmatprep.subr.mxu0 %v261_v59 }
  0x60   : > { %831 = vmatprep.subr.mxu1 %v261_v59  ;;  %391 = vmatpush1.msra.mxu0 %v260_v61 }
  0x61   : > { %945 = vxpose.xlu0.b32.cont [9/16] %v944_v47, 128  ;;  %847 = vmatpush1.msra.mxu1 %v260_v61 }
  0x62   : > { %392 = vmatprep.subr.mxu0 %v259_v0  ;;  %832 = vmatprep.subr.mxu1 %v259_v0 }
  0x63   : > { %393 = vmatpush1.msra.mxu0 %v258_v1  ;;  %848 = vmatpush1.msra.mxu1 %v258_v1 }
  0x64   : > { %394 = vmatprep.subr.mxu0 %v257_v2  ;;  %833 = vmatprep.subr.mxu1 %v257_v2  ;;  %v290_v2 = vlaneseq }
  0x65   : > { %947 = vxpose.xlu0.b32.cont [10/16] %v946_v54, 128  ;;  %395 = vmatpush1.msra.mxu0 %v256_v4 }
  0x66   : > { %849 = vmatpush1.msra.mxu1 %v256_v4 }
  0x69   : > { %949 = vxpose.xlu0.b32.cont [11/16] %v948_v60, 128 }
  0x6d   : > { %951 = vxpose.xlu0.b32.cont [12/16] %v950_v3, 128  ;;  %v291_v3 = vshrl.u32 %v290_v2, 7 }
  0x6f   : > { %v292_v4 = vsub.s32 0, %v291_v3  ;;  %v296_v7 = vsub.s32 1, %v291_v3 }
  0x71   : > { %953 = vxpose.xlu0.b32.cont [13/16] %v952_v8, 128  ;;  %v1411_v8 = vrot.slane %v288_v6, %v292_v4  ;;  %v1413_v9 = vrot.slane %v288_v6, %v296_v7 }
  0x75   : > { %955 = vxpose.xlu0.b32.cont [14/16] %v954_v11, 128 }
  0x79   : > { %957 = vxpose.xlu0.b32.cont [15/16] %v956_v14, 128 }
  0x7d   : > { %959 = vxpose.xlu0.b32.end [16/16] %v958_v17, 128 }
  0xbd   : > { %v960_v18 = vpop.trf.xlu0 }
  0xbe   : > { %v961_v19 = vunpack.i.l.bf16 %v960_v18  ;;  %v964_v20 = vunpack.i.h.bf16 %v960_v18 }
  0xc0   : > { %429 = vmatmul.mubr.f32.vlgmr.msra.gmra.mxu0 %v961_v19  ;;  %525 = vmatmul.mubr.f32.vlgmr.msra.gmra.mxu1 %v964_v20 }
  0xc1   : > { %v965_v21 = vpop.trf.xlu0  ;;  %434 = vmatprep.mubr.f32.mxu0 %v1184_v5  ;;  %530 = vmatprep.mubr.f32.mxu1 %v1184_v5 }
  0xc2   : > { %v966_v22 = vunpack.i.l.bf16 %v965_v21  ;;  %v969_v23 = vunpack.i.h.bf16 %v965_v21 }
  0xc4   : > { %435 = vmatmul.mubr.f32.gmra.mxu0 %v966_v22  ;;  %531 = vmatmul.mubr.f32.gmra.mxu1 %v969_v23 }
  0xc5   : > { %v970_v24 = vpop.trf.xlu0  ;;  %440 = vmatprep.mubr.f32.mxu0 %v1184_v5  ;;  %536 = vmatprep.mubr.f32.mxu1 %v1184_v5 }
  0xc6   : > { %v971_v25 = vunpack.i.l.bf16 %v970_v24  ;;  %v974_v26 = vunpack.i.h.bf16 %v970_v24 }
  0xc8   : > { %441 = vmatmul.mubr.f32.gmra.mxu0 %v971_v25  ;;  %537 = vmatmul.mubr.f32.gmra.mxu1 %v974_v26 }
  0xc9   : > { %v975_v27 = vpop.trf.xlu0  ;;  %446 = vmatprep.mubr.f32.mxu0 %v1184_v5  ;;  %542 = vmatprep.mubr.f32.mxu1 %v1184_v5 }
  0xca   : > { %v976_v28 = vunpack.i.l.bf16 %v975_v27  ;;  %v979_v29 = vunpack.i.h.bf16 %v975_v27 }
  0xcc   : > { %447 = vmatmul.mubr.f32.gmra.mxu0 %v976_v28  ;;  %543 = vmatmul.mubr.f32.gmra.mxu1 %v979_v29 }
  0xcd   : > { %v980_v30 = vpop.trf.xlu0  ;;  %452 = vmatprep.mubr.f32.mxu0 %v1184_v5  ;;  %548 = vmatprep.mubr.f32.mxu1 %v1184_v5 }
  0xce   : > { %v981_v31 = vunpack.i.l.bf16 %v980_v30  ;;  %v984_v32 = vunpack.i.h.bf16 %v980_v30 }
  0xd0   : > { %453 = vmatmul.mubr.f32.gmra.mxu0 %v981_v31  ;;  %549 = vmatmul.mubr.f32.gmra.mxu1 %v984_v32 }
  0xd1   : > { %v985_v33 = vpop.trf.xlu0  ;;  %458 = vmatprep.mubr.f32.mxu0 %v1184_v5  ;;  %554 = vmatprep.mubr.f32.mxu1 %v1184_v5 }
  0xd2   : > { %v986_v34 = vunpack.i.l.bf16 %v985_v33  ;;  %v989_v35 = vunpack.i.h.bf16 %v985_v33 }
  0xd4   : > { %459 = vmatmul.mubr.f32.gmra.mxu0 %v986_v34  ;;  %555 = vmatmul.mubr.f32.gmra.mxu1 %v989_v35 }
  0xd5   : > { %v990_v36 = vpop.trf.xlu0  ;;  %464 = vmatprep.mubr.f32.mxu0 %v1184_v5  ;;  %560 = vmatprep.mubr.f32.mxu1 %v1184_v5 }
  0xd6   : > { %v991_v37 = vunpack.i.l.bf16 %v990_v36  ;;  %v994_v38 = vunpack.i.h.bf16 %v990_v36 }
  0xd8   : > { %465 = vmatmul.mubr.f32.gmra.mxu0 %v991_v37  ;;  %561 = vmatmul.mubr.f32.gmra.mxu1 %v994_v38 }
  0xd9   : > { %v995_v39 = vpop.trf.xlu0  ;;  %470 = vmatprep.mubr.f32.mxu0 %v1184_v5  ;;  %566 = vmatprep.mubr.f32.mxu1 %v1184_v5 }
  0xda   : > { %v996_v40 = vunpack.i.l.bf16 %v995_v39  ;;  %v999_v41 = vunpack.i.h.bf16 %v995_v39 }
  0xdc   : > { %471 = vmatmul.mubr.f32.gmra.mxu0 %v996_v40  ;;  %567 = vmatmul.mubr.f32.gmra.mxu1 %v999_v41 }
  0xdd   : > { %v1000_v42 = vpop.trf.xlu0  ;;  %476 = vmatprep.mubr.f32.mxu0 %v1184_v5  ;;  %572 = vmatprep.mubr.f32.mxu1 %v1184_v5 }
  0xde   : > { %v1001_v43 = vunpack.i.l.bf16 %v1000_v42  ;;  %v1004_v44 = vunpack.i.h.bf16 %v1000_v42 }
  0xe0   : > { %477 = vmatmul.mubr.f32.gmra.mxu0 %v1001_v43  ;;  %573 = vmatmul.mubr.f32.gmra.mxu1 %v1004_v44 }
  0xe1   : > { %v1005_v45 = vpop.trf.xlu0  ;;  %482 = vmatprep.mubr.f32.mxu0 %v1184_v5  ;;  %578 = vmatprep.mubr.f32.mxu1 %v1184_v5 }
  0xe2   : > { %v1006_v46 = vunpack.i.l.bf16 %v1005_v45  ;;  %v1009_v47 = vunpack.i.h.bf16 %v1005_v45 }
  0xe4   : > { %483 = vmatmul.mubr.f32.gmra.mxu0 %v1006_v46  ;;  %579 = vmatmul.mubr.f32.gmra.mxu1 %v1009_v47 }
  0xe5   : > { %v1010_v48 = vpop.trf.xlu0  ;;  %488 = vmatprep.mubr.f32.mxu0 %v1184_v5  ;;  %584 = vmatprep.mubr.f32.mxu1 %v1184_v5 }
  0xe6   : > { %v1011_v49 = vunpack.i.l.bf16 %v1010_v48  ;;  %v1014_v50 = vunpack.i.h.bf16 %v1010_v48 }
  0xe8   : > { %489 = vmatmul.mubr.f32.gmra.mxu0 %v1011_v49  ;;  %585 = vmatmul.mubr.f32.gmra.mxu1 %v1014_v50 }
  0xe9   : > { %v1015_v51 = vpop.trf.xlu0  ;;  %494 = vmatprep.mubr.f32.mxu0 %v1184_v5  ;;  %590 = vmatprep.mubr.f32.mxu1 %v1184_v5 }
  0xea   : > { %v1016_v52 = vunpack.i.l.bf16 %v1015_v51  ;;  %v1019_v53 = vunpack.i.h.bf16 %v1015_v51 }
  0xec   : > { %495 = vmatmul.mubr.f32.gmra.mxu0 %v1016_v52  ;;  %591 = vmatmul.mubr.f32.gmra.mxu1 %v1019_v53 }
  0xed   : > { %v1020_v54 = vpop.trf.xlu0  ;;  %500 = vmatprep.mubr.f32.mxu0 %v1184_v5  ;;  %596 = vmatprep.mubr.f32.mxu1 %v1184_v5 }
  0xee   : > { %v1021_v55 = vunpack.i.l.bf16 %v1020_v54  ;;  %v1024_v56 = vunpack.i.h.bf16 %v1020_v54 }
  0xf0   : > { %501 = vmatmul.mubr.f32.gmra.mxu0 %v1021_v55  ;;  %597 = vmatmul.mubr.f32.gmra.mxu1 %v1024_v56 }
  0xf1   : > { %v1025_v57 = vpop.trf.xlu0  ;;  %506 = vmatprep.mubr.f32.mxu0 %v1184_v5  ;;  %602 = vmatprep.mubr.f32.mxu1 %v1184_v5 }
  0xf2   : > { %v1026_v58 = vunpack.i.l.bf16 %v1025_v57  ;;  %v1029_v59 = vunpack.i.h.bf16 %v1025_v57 }
  0xf4   : > { %507 = vmatmul.mubr.f32.gmra.mxu0 %v1026_v58  ;;  %603 = vmatmul.mubr.f32.gmra.mxu1 %v1029_v59 }
  0xf5   : > { %v1030_v60 = vpop.trf.xlu0  ;;  %512 = vmatprep.mubr.f32.mxu0 %v1184_v5  ;;  %608 = vmatprep.mubr.f32.mxu1 %v1184_v5 }
  0xf6   : > { %v1031_v61 = vunpack.i.l.bf16 %v1030_v60  ;;  %v1034_v62 = vunpack.i.h.bf16 %v1030_v60 }
  0xf8   : > { %513 = vmatmul.mubr.f32.gmra.mxu0 %v1031_v61  ;;  %609 = vmatmul.mubr.f32.gmra.mxu1 %v1034_v62 }
  0xf9   : > { %v1035_v63 = vpop.trf.xlu0  ;;  %518 = vmatprep.mubr.f32.mxu0 %v1184_v5  ;;  %614 = vmatprep.mubr.f32.mxu1 %v1184_v5 }
  0xfa   : > { %v1039_v0 = vunpack.i.h.bf16 %v1035_v63  ;;  %v1036_v1 = vunpack.i.l.bf16 %v1035_v63 }
  0xfc   : > { %519 = vmatmul.mubr.f32.gmra.mxu0 %v1036_v1  ;;  %615 = vmatmul.mubr.f32.gmra.mxu1 %v1039_v0 }
 0x180   : > { %v430_v10 = vpop.f32.mrf.mxu0  ;;  %v526_v11 = vpop.f32.mrf.mxu1 }
 0x181   : > { %v431_v5 = vadd.f32 %v430_v10, %v1411_v8  ;;  %v527_v12 = vadd.f32 %v526_v11, %v1411_v8 }
 0x182   : > { %v432_v13 = vpop.f32.mrf.mxu0  ;;  %v528_v14 = vpop.f32.mrf.mxu1 }
 0x183   : > { %621 = vst [vmem:[%s1417_s30] sm:$0xff] %v431_v5  ;;  %653 = vst [vmem:[%s1417_s30 + $0x100] sm:$0xff] %v527_v12  ;;  %v433_v15 = vadd.f32 %v432_v13, %v1413_v9  ;;  %v529_v16 = vadd.f32 %v528_v14, %v1413_v9 }
 0x184   : > { %v436_v17 = vpop.f32.mrf.mxu0  ;;  %v532_v18 = vpop.f32.mrf.mxu1 }
 0x185   : > { %622 = vst [vmem:[%s1417_s30 + $0x8] sm:$0xff] %v433_v15  ;;  %654 = vst [vmem:[%s1417_s30 + $0x108] sm:$0xff] %v529_v16  ;;  %v437_v19 = vadd.f32 %v436_v17, %v1411_v8  ;;  %v533_v20 = vadd.f32 %v532_v18, %v1411_v8 }
 0x186   : > { %v438_v21 = vpop.f32.mrf.mxu0  ;;  %v534_v22 = vpop.f32.mrf.mxu1 }
 0x187   : > { %623 = vst [vmem:[%s1417_s30 + $0x10] sm:$0xff] %v437_v19  ;;  %655 = vst [vmem:[%s1417_s30 + $0x110] sm:$0xff] %v533_v20  ;;  %v439_v23 = vadd.f32 %v438_v21, %v1413_v9  ;;  %v535_v24 = vadd.f32 %v534_v22, %v1413_v9 }
 0x188   : > { %v442_v25 = vpop.f32.mrf.mxu0  ;;  %v538_v26 = vpop.f32.mrf.mxu1 }
 0x189   : > { %624 = vst [vmem:[%s1417_s30 + $0x18] sm:$0xff] %v439_v23  ;;  %656 = vst [vmem:[%s1417_s30 + $0x118] sm:$0xff] %v535_v24  ;;  %v443_v27 = vadd.f32 %v442_v25, %v1411_v8  ;;  %v539_v28 = vadd.f32 %v538_v26, %v1411_v8 }
 0x18a   : > { %v444_v29 = vpop.f32.mrf.mxu0  ;;  %v540_v30 = vpop.f32.mrf.mxu1 }
 0x18b   : > { %625 = vst [vmem:[%s1417_s30 + $0x20] sm:$0xff] %v443_v27  ;;  %657 = vst [vmem:[%s1417_s30 + $0x120] sm:$0xff] %v539_v28  ;;  %v445_v31 = vadd.f32 %v444_v29, %v1413_v9  ;;  %v541_v32 = vadd.f32 %v540_v30, %v1413_v9 }
 0x18c   : > { %v448_v33 = vpop.f32.mrf.mxu0  ;;  %v544_v34 = vpop.f32.mrf.mxu1 }
 0x18d   : > { %626 = vst [vmem:[%s1417_s30 + $0x28] sm:$0xff] %v445_v31  ;;  %658 = vst [vmem:[%s1417_s30 + $0x128] sm:$0xff] %v541_v32  ;;  %v449_v35 = vadd.f32 %v448_v33, %v1411_v8  ;;  %v545_v36 = vadd.f32 %v544_v34, %v1411_v8 }
 0x18e   : > { %v450_v37 = vpop.f32.mrf.mxu0  ;;  %v546_v38 = vpop.f32.mrf.mxu1 }
 0x18f   : > { %627 = vst [vmem:[%s1417_s30 + $0x30] sm:$0xff] %v449_v35  ;;  %659 = vst [vmem:[%s1417_s30 + $0x130] sm:$0xff] %v545_v36  ;;  %v451_v39 = vadd.f32 %v450_v37, %v1413_v9  ;;  %v547_v40 = vadd.f32 %v546_v38, %v1413_v9 }
 0x190   : > { %v454_v41 = vpop.f32.mrf.mxu0  ;;  %v550_v42 = vpop.f32.mrf.mxu1 }
 0x191   : > { %628 = vst [vmem:[%s1417_s30 + $0x38] sm:$0xff] %v451_v39  ;;  %660 = vst [vmem:[%s1417_s30 + $0x138] sm:$0xff] %v547_v40  ;;  %v455_v43 = vadd.f32 %v454_v41, %v1411_v8  ;;  %v551_v44 = vadd.f32 %v550_v42, %v1411_v8 }
 0x192   : > { %v456_v45 = vpop.f32.mrf.mxu0  ;;  %v552_v46 = vpop.f32.mrf.mxu1 }
 0x193   : > { %629 = vst [vmem:[%s1417_s30 + $0x40] sm:$0xff] %v455_v43  ;;  %661 = vst [vmem:[%s1417_s30 + $0x140] sm:$0xff] %v551_v44  ;;  %v457_v47 = vadd.f32 %v456_v45, %v1413_v9  ;;  %v553_v48 = vadd.f32 %v552_v46, %v1413_v9 }
 0x194   : > { %v460_v49 = vpop.f32.mrf.mxu0  ;;  %v556_v50 = vpop.f32.mrf.mxu1 }
 0x195   : > { %630 = vst [vmem:[%s1417_s30 + $0x48] sm:$0xff] %v457_v47  ;;  %662 = vst [vmem:[%s1417_s30 + $0x148] sm:$0xff] %v553_v48  ;;  %v461_v51 = vadd.f32 %v460_v49, %v1411_v8  ;;  %v557_v52 = vadd.f32 %v556_v50, %v1411_v8 }
 0x196   : > { %v462_v53 = vpop.f32.mrf.mxu0  ;;  %v558_v54 = vpop.f32.mrf.mxu1 }
 0x197   : > { %631 = vst [vmem:[%s1417_s30 + $0x50] sm:$0xff] %v461_v51  ;;  %663 = vst [vmem:[%s1417_s30 + $0x150] sm:$0xff] %v557_v52  ;;  %v463_v55 = vadd.f32 %v462_v53, %v1413_v9  ;;  %v559_v56 = vadd.f32 %v558_v54, %v1413_v9 }
 0x198   : > { %v466_v57 = vpop.f32.mrf.mxu0  ;;  %v562_v58 = vpop.f32.mrf.mxu1 }
 0x199   : > { %632 = vst [vmem:[%s1417_s30 + $0x58] sm:$0xff] %v463_v55  ;;  %664 = vst [vmem:[%s1417_s30 + $0x158] sm:$0xff] %v559_v56  ;;  %v467_v59 = vadd.f32 %v466_v57, %v1411_v8  ;;  %v563_v60 = vadd.f32 %v562_v58, %v1411_v8 }
 0x19a   : > { %v468_v61 = vpop.f32.mrf.mxu0  ;;  %v564_v62 = vpop.f32.mrf.mxu1 }
 0x19b   : > { %633 = vst [vmem:[%s1417_s30 + $0x60] sm:$0xff] %v467_v59  ;;  %665 = vst [vmem:[%s1417_s30 + $0x160] sm:$0xff] %v563_v60  ;;  %v469_v63 = vadd.f32 %v468_v61, %v1413_v9  ;;  %v565_v0 = vadd.f32 %v564_v62, %v1413_v9 }
 0x19c   : > { %v472_v1 = vpop.f32.mrf.mxu0  ;;  %v568_v2 = vpop.f32.mrf.mxu1 }
 0x19d   : > { %634 = vst [vmem:[%s1417_s30 + $0x68] sm:$0xff] %v469_v63  ;;  %666 = vst [vmem:[%s1417_s30 + $0x168] sm:$0xff] %v565_v0  ;;  %v473_v3 = vadd.f32 %v472_v1, %v1411_v8  ;;  %v569_v4 = vadd.f32 %v568_v2, %v1411_v8 }
 0x19e   : > { %v474_v6 = vpop.f32.mrf.mxu0  ;;  %v570_v7 = vpop.f32.mrf.mxu1 }
 0x19f   : > { %635 = vst [vmem:[%s1417_s30 + $0x70] sm:$0xff] %v473_v3  ;;  %667 = vst [vmem:[%s1417_s30 + $0x170] sm:$0xff] %v569_v4  ;;  %v475_v10 = vadd.f32 %v474_v6, %v1413_v9  ;;  %v571_v11 = vadd.f32 %v570_v7, %v1413_v9 }
 0x1a0   : > { %v478_v5 = vpop.f32.mrf.mxu0  ;;  %v574_v12 = vpop.f32.mrf.mxu1 }
 0x1a1   : > { %636 = vst [vmem:[%s1417_s30 + $0x78] sm:$0xff] %v475_v10  ;;  %668 = vst [vmem:[%s1417_s30 + $0x178] sm:$0xff] %v571_v11  ;;  %v479_v13 = vadd.f32 %v478_v5, %v1411_v8  ;;  %v575_v14 = vadd.f32 %v574_v12, %v1411_v8 }
 0x1a2   : > { %v480_v15 = vpop.f32.mrf.mxu0  ;;  %v576_v16 = vpop.f32.mrf.mxu1 }
 0x1a3   : > { %637 = vst [vmem:[%s1417_s30 + $0x80] sm:$0xff] %v479_v13  ;;  %669 = vst [vmem:[%s1417_s30 + $0x180] sm:$0xff] %v575_v14  ;;  %v481_v17 = vadd.f32 %v480_v15, %v1413_v9  ;;  %v577_v18 = vadd.f32 %v576_v16, %v1413_v9 }
 0x1a4   : > { %v484_v19 = vpop.f32.mrf.mxu0  ;;  %v580_v20 = vpop.f32.mrf.mxu1 }
 0x1a5   : > { %638 = vst [vmem:[%s1417_s30 + $0x88] sm:$0xff] %v481_v17  ;;  %670 = vst [vmem:[%s1417_s30 + $0x188] sm:$0xff] %v577_v18  ;;  %v485_v21 = vadd.f32 %v484_v19, %v1411_v8  ;;  %v581_v22 = vadd.f32 %v580_v20, %v1411_v8 }
 0x1a6   : > { %v486_v23 = vpop.f32.mrf.mxu0  ;;  %v582_v24 = vpop.f32.mrf.mxu1 }
 0x1a7   : > { %639 = vst [vmem:[%s1417_s30 + $0x90] sm:$0xff] %v485_v21  ;;  %671 = vst [vmem:[%s1417_s30 + $0x190] sm:$0xff] %v581_v22  ;;  %v487_v25 = vadd.f32 %v486_v23, %v1413_v9  ;;  %v583_v26 = vadd.f32 %v582_v24, %v1413_v9 }
 0x1a8   : > { %v490_v27 = vpop.f32.mrf.mxu0  ;;  %v586_v28 = vpop.f32.mrf.mxu1 }
 0x1a9   : > { %640 = vst [vmem:[%s1417_s30 + $0x98] sm:$0xff] %v487_v25  ;;  %672 = vst [vmem:[%s1417_s30 + $0x198] sm:$0xff] %v583_v26  ;;  %v491_v29 = vadd.f32 %v490_v27, %v1411_v8  ;;  %v587_v30 = vadd.f32 %v586_v28, %v1411_v8 }
 0x1aa   : > { %v492_v31 = vpop.f32.mrf.mxu0  ;;  %v588_v32 = vpop.f32.mrf.mxu1 }
 0x1ab   : > { %641 = vst [vmem:[%s1417_s30 + $0xa0] sm:$0xff] %v491_v29  ;;  %673 = vst [vmem:[%s1417_s30 + $0x1a0] sm:$0xff] %v587_v30  ;;  %v493_v33 = vadd.f32 %v492_v31, %v1413_v9  ;;  %v589_v34 = vadd.f32 %v588_v32, %v1413_v9 }
 0x1ac   : > { %v496_v35 = vpop.f32.mrf.mxu0  ;;  %v592_v36 = vpop.f32.mrf.mxu1 }
 0x1ad   : > { %642 = vst [vmem:[%s1417_s30 + $0xa8] sm:$0xff] %v493_v33  ;;  %674 = vst [vmem:[%s1417_s30 + $0x1a8] sm:$0xff] %v589_v34  ;;  %v497_v37 = vadd.f32 %v496_v35, %v1411_v8  ;;  %v593_v38 = vadd.f32 %v592_v36, %v1411_v8 }
 0x1ae   : > { %v498_v39 = vpop.f32.mrf.mxu0  ;;  %v594_v40 = vpop.f32.mrf.mxu1 }
 0x1af   : > { %643 = vst [vmem:[%s1417_s30 + $0xb0] sm:$0xff] %v497_v37  ;;  %675 = vst [vmem:[%s1417_s30 + $0x1b0] sm:$0xff] %v593_v38  ;;  %v499_v41 = vadd.f32 %v498_v39, %v1413_v9  ;;  %v595_v42 = vadd.f32 %v594_v40, %v1413_v9 }
 0x1b0   : > { %v502_v43 = vpop.f32.mrf.mxu0  ;;  %v598_v44 = vpop.f32.mrf.mxu1 }
 0x1b1   : > { %644 = vst [vmem:[%s1417_s30 + $0xb8] sm:$0xff] %v499_v41  ;;  %676 = vst [vmem:[%s1417_s30 + $0x1b8] sm:$0xff] %v595_v42  ;;  %v503_v45 = vadd.f32 %v502_v43, %v1411_v8  ;;  %v599_v46 = vadd.f32 %v598_v44, %v1411_v8 }
 0x1b2   : > { %v504_v47 = vpop.f32.mrf.mxu0  ;;  %v600_v48 = vpop.f32.mrf.mxu1 }
 0x1b3   : > { %645 = vst [vmem:[%s1417_s30 + $0xc0] sm:$0xff] %v503_v45  ;;  %677 = vst [vmem:[%s1417_s30 + $0x1c0] sm:$0xff] %v599_v46  ;;  %v505_v49 = vadd.f32 %v504_v47, %v1413_v9  ;;  %v601_v50 = vadd.f32 %v600_v48, %v1413_v9 }
 0x1b4   : > { %v508_v51 = vpop.f32.mrf.mxu0  ;;  %v604_v52 = vpop.f32.mrf.mxu1 }
 0x1b5   : > { %646 = vst [vmem:[%s1417_s30 + $0xc8] sm:$0xff] %v505_v49  ;;  %678 = vst [vmem:[%s1417_s30 + $0x1c8] sm:$0xff] %v601_v50  ;;  %v509_v53 = vadd.f32 %v508_v51, %v1411_v8  ;;  %v605_v54 = vadd.f32 %v604_v52, %v1411_v8 }
 0x1b6   : > { %v510_v55 = vpop.f32.mrf.mxu0  ;;  %v606_v56 = vpop.f32.mrf.mxu1 }
 0x1b7   : > { %647 = vst [vmem:[%s1417_s30 + $0xd0] sm:$0xff] %v509_v53  ;;  %679 = vst [vmem:[%s1417_s30 + $0x1d0] sm:$0xff] %v605_v54  ;;  %v511_v57 = vadd.f32 %v510_v55, %v1413_v9  ;;  %v607_v58 = vadd.f32 %v606_v56, %v1413_v9 }
 0x1b8   : > { %v514_v59 = vpop.f32.mrf.mxu0  ;;  %v610_v60 = vpop.f32.mrf.mxu1 }
 0x1b9   : > { %648 = vst [vmem:[%s1417_s30 + $0xd8] sm:$0xff] %v511_v57  ;;  %680 = vst [vmem:[%s1417_s30 + $0x1d8] sm:$0xff] %v607_v58  ;;  %v515_v61 = vadd.f32 %v514_v59, %v1411_v8  ;;  %v611_v62 = vadd.f32 %v610_v60, %v1411_v8 }
 0x1ba   : > { %v516_v63 = vpop.f32.mrf.mxu0  ;;  %v612_v0 = vpop.f32.mrf.mxu1 }
 0x1bb   : > { %649 = vst [vmem:[%s1417_s30 + $0xe0] sm:$0xff] %v515_v61  ;;  %681 = vst [vmem:[%s1417_s30 + $0x1e0] sm:$0xff] %v611_v62  ;;  %v517_v1 = vadd.f32 %v516_v63, %v1413_v9  ;;  %v613_v2 = vadd.f32 %v612_v0, %v1413_v9 }
 0x1bc   : > { %v520_v3 = vpop.f32.mrf.mxu0  ;;  %v616_v4 = vpop.f32.mrf.mxu1 }
 0x1bd   : > { %650 = vst [vmem:[%s1417_s30 + $0xe8] sm:$0xff] %v517_v1  ;;  %682 = vst [vmem:[%s1417_s30 + $0x1e8] sm:$0xff] %v613_v2  ;;  %v521_v6 = vadd.f32 %v520_v3, %v1411_v8  ;;  %v617_v7 = vadd.f32 %v616_v4, %v1411_v8 }
 0x1be   : > { %v522_v10 = vpop.f32.mrf.mxu0  ;;  %v618_v11 = vpop.f32.mrf.mxu1 }
 0x1bf   : > { %651 = vst [vmem:[%s1417_s30 + $0xf0] sm:$0xff] %v521_v6  ;;  %683 = vst [vmem:[%s1417_s30 + $0x1f0] sm:$0xff] %v617_v7  ;;  %v523_v5 = vadd.f32 %v522_v10, %v1413_v9  ;;  %v619_v12 = vadd.f32 %v618_v11, %v1413_v9 }
 0x1c1   : > { %652 = vst [vmem:[%s1417_s30 + $0xf8] sm:$0xff] %v523_v5  ;;  %684 = vst [vmem:[%s1417_s30 + $0x1f8] sm:$0xff] %v619_v12 }
 0x1c2   : > { %1107 = shalt.err (!%p1104_p5)
}
 0x1c3   : > { %s1108_s4 = scalar_lea.hbm %s1544_s10, 8192  ;;  %s1112_s20 = scalar_lea.hbm %s1603_s3, 16384 }
 0x1c4   : > { %p1109_p7 = scmp.ne.s32.totalorder %s1544_s10, %s1108_s4  ;;  %p1113_p9 = scmp.lt.s32.totalorder %s1544_s10, %s1603_s3 }
 0x1c5   : > { %p1114_p11 = scmp.lt.s32.totalorder %s1112_s20, %s1108_s4 }
 0x1c6   : > { %p1110_p4 = pnand %p1109_p7, %p1298_p13 }
 0x1c7   : > { %p1115_p10 = por %p1114_p11, %p1113_p9 }
 0x1c8   : > { %p1111_p6 = pneg %p1110_p4 }
 0x1ca   : > { %p1116_p1 = pnand %p1115_p10, %p1111_p6 }
 0x1cc   : > { %1119 = shalt.err (!%p1116_p1)
}
 0x1cd   : > { %s1186_s30 = smov 256   ;;  %s1187_s29 = smov 16  }
 0x1ce   : > { %856 = dma.vmem_to_hbm [thread:$0]  (%p1298_p13), %s1546_s5, 8192, %s1544_s10, %s686_s15, %s1186_s30, %s1186_s30, %s1187_s29  }
 0x1cf PF: > { %s717_s6 = sand.u32 1, %s1158_s12   ;;  %p1619_p8 = scmp.ne.s32.totalorder %s1610_s23, 0 }
 0x1d0   : > { %p1620_p12 = scmp.ge.s32.totalorder %s1178_s17, 2  ;;  %s718_s21 = scalar_lea.sflag [#allocation4], %s717_s6 }
 0x1d2   : > { %p867_p0 = pnand %p1620_p12, %p1619_p8 }
 0x1d4   : > { %p868_p2 = pneg %p867_p0 }
 0x1d6   : > { %1153 = dma.done.wait (%p868_p2), %s718_s21, 8192  }
 0x1d7   : > { %1155 = vsyncadd (%p868_p2), %s718_s21, 4294959104  ;;  %s20_s17 = sadd.s32 1, %s1178_s17   ;;  %s1621_s12 = smov %s1162_s13 }
 0x1d8   : > { %p17_p3 = scmp.ge.s32.totalorder %s20_s17, 4   ;;  %s1622_s13 = smov %s1166_s14 }
 0x1d9   : > { %s1623_s14 = smov %s1307_s19  ;;  %s1624_s15 = smov %s1174_s16 }
 0x1da   : > { %s1625_s16 = smov %s1627_s28  ;;  %19 = sbr.rel (!%p17_p3) target bundleno = 7 (0x7), region = 81 }
 0x1df   :  { %723 = vsyncpa [#allocation3], 1 }
 0x1e0   :  { %725 = vsyncpa [#allocation3 + $0x1], 1 }
 0x1e1   :  { %726 = vsyncpa [#allocation6], 1 }
 0x1e2   :  { %727 = vsyncpa [#allocation4], 1 }
 0x1e3   :  { %729 = vsyncpa [#allocation4 + $0x1], 1 }

</bundles_post_ra>
